<compile_context>
chip_gen: v7x
topology: tpu7x:2x2x1
jax: 0.10.0
libtpu: 0.0.40
codegen_flags: <defaults>
</compile_context>

<pallas_src>
import jax
import jax.numpy as jnp
from jax.experimental import pallas as pl
from jax.experimental.pallas import tpu as pltpu


def _ceil_to(n, m):
    return ((n + m - 1) // m) * m


def _pick_tile_b(batch, max_tile_b, min_grid_steps=2):
    """Event-axis tile size.

    Tiny batches run as a single full-dim block; larger batches get at least
    `min_grid_steps` grid steps (so the v7x megacore can shard the parallel
    event axis across both TensorCores), sublane-aligned and capped so the
    VMEM budget (v7x: 64 MiB physical / 32 MiB scoped default) is respected.
    """
    if batch <= 8:
        return batch
    return min(max_tile_b, _ceil_to(pl.cdiv(batch, min_grid_steps), 8))


def _make_kernel(n_particles, n_features, pool_scale, compute_dtype):
    """Fused PFN forward: VPU phi-layer-1 -> MXU phi MLP -> sum pool -> F MLP."""

    def kernel(x_ref, pw1_ref, w_ref, b_ref, out_ref):
        # torch.nan_to_num default (nan -> 0, +/-inf -> max/min finite).
        x = jnp.nan_to_num(x_ref[...])                      # [M, F] f32, M = tile_b*P

        def bias(j):
            return b_ref[j:j + 1, :]                        # [1, 128] f32

        # ---- phi layer 1 on the VPU: K=4 broadcast-FMAs, zero MXU pushes. ----
        h = bias(0) + x[:, 0:1] * pw1_ref[0:1, :]
        for k in range(1, n_features):
            h = h + x[:, k:k + 1] * pw1_ref[k:k + 1, :]
        h = jnp.maximum(h, 0.0)                             # [M, 128] f32

        def dense(a, wj, bj):
            # bf16 MXU inputs, f32 accumulation, f32 bias add.
            return jnp.dot(a.astype(compute_dtype), w_ref[wj],
                           preferred_element_type=jnp.float32) + bias(bj)

        def dense_relu(a, wj, bj):
            return jnp.maximum(dense(a, wj, bj), 0.0)

        # ---- remaining per-particle phi layers (MXU, long M). ----
        h = dense_relu(h, 0, 1)
        h = dense_relu(h, 1, 2)
        z = dense(h, 2, 3)                                  # [M, Lpad]

        # ---- sum pool over particles: AvgPool2d((P,1)) * input_size. ----
        tile_b = z.shape[0] // n_particles
        z3 = z.reshape(tile_b, n_particles, z.shape[1])     # [tile_b, P, Lpad]
        pooled = jnp.sum(z3, axis=1) * pool_scale           # [tile_b, Lpad]

        # ---- PFN classifier head (MXU). ----
        g = dense_relu(pooled, 3, 4)
        g = dense_relu(g, 4, 5)
        g = dense_relu(g, 5, 6)
        g = dense_relu(g, 6, 7)
        out_ref[...] = dense(g, 7, 8)                       # [tile_b, 128] lane-dense

    return kernel


def make_params(latent_space_dim, key):
    """Deterministic synthetic parameters with the module's shapes.

    Weights stored [in, out] (transposed vs torch.nn.Linear) so they apply as
    x @ W + b.  Biases stored [1, out].
    """
    input_size = 4
    hidden = 100
    shapes = [
        # ParticleMapping(4, 32, L, [100, 100]) stack
        (input_size, hidden), (hidden, hidden), (hidden, hidden), (hidden, latent_space_dim),
        # PFN stack
        (latent_space_dim, hidden), (hidden, hidden), (hidden, hidden), (hidden, hidden), (hidden, 1),
    ]
    params = []
    for shape in shapes:
        key, kw, kb = jax.random.split(key, 3)
        fan_in = shape[0]
        scale = 1.0 / jnp.sqrt(jnp.float32(fan_in))
        w = jax.random.uniform(kw, shape, jnp.float32, -scale, scale)
        b = jax.random.uniform(kb, (1, shape[1]), jnp.float32, -scale, scale)
        params.append((w, b))
    return params


def _pack_params(params, compute_dtype, h_pad=128):
    """Zero-pad every layer to 128 lanes (exact: zeros contribute nothing).

    Layer 0's weight stays f32 (VPU path); layers 1..8 are stacked into one
    bf16 [8,128,128] array; all 9 biases into one f32 [9,128] array.
    """
    w0, _ = params[0]
    pw1 = jnp.zeros((w0.shape[0], h_pad), jnp.float32).at[:, :w0.shape[1]].set(w0)

    w_list, b_list = [], []
    for i, (w, b) in enumerate(params):
        b_list.append(jnp.zeros((h_pad,), jnp.float32).at[:w.shape[1]].set(b.reshape(-1)))
        if i == 0:
            continue
        wp = jnp.zeros((h_pad, h_pad), jnp.float32).at[:w.shape[0], :w.shape[1]].set(w)
        w_list.append(wp.astype(compute_dtype))
    return pw1, jnp.stack(w_list), jnp.stack(b_list)


def pfn_forward(x, params, input_size=4, compute_dtype=jnp.bfloat16,
                max_tile_b=512, vmem_limit_bytes=32 * 1024 * 1024):
    """x: [B, P, F] float32 with F == input_size; returns [B, 1] float32.

    Defaults (max_tile_b=512, vmem_limit_bytes=32 MiB) are sized for v7x; on
    v5e/v6e they can be raised (e.g. 1024–2048 / 64 MiB) for a few-% win.
    """
    B, P, F = x.shape
    assert F == input_size
    out_dim = params[-1][0].shape[1]                        # 1

    pw1, w_stack, b_stack = _pack_params(params, compute_dtype)
    h_pad = w_stack.shape[-1]                               # 128

    x2d = x.reshape(B * P, F)
    tile_b = _pick_tile_b(B, max_tile_b)
    grid = (pl.cdiv(B, tile_b),)

    kernel = _make_kernel(P, F, float(input_size) / float(P), compute_dtype)

    in_specs = [
        # x blocks are pipelined HBM<->VMEM along the event grid.
        pl.BlockSpec((tile_b * P, F), lambda i: (i, 0)),
        # Constant index maps: parameters DMA'd once, VMEM resident.
        pl.BlockSpec(pw1.shape, lambda i: (0, 0)),
        pl.BlockSpec(w_stack.shape, lambda i: (0, 0, 0)),
        pl.BlockSpec(b_stack.shape, lambda i: (0, 0)),
    ]
    out_spec = pl.BlockSpec((tile_b, h_pad), lambda i: (i, 0))

    flops = int(2 * B * P * (F * h_pad + 3 * h_pad * h_pad)
                + 2 * B * 5 * h_pad * h_pad)
    bytes_accessed = int(x2d.size * 4 + pw1.size * 4
                         + w_stack.size * w_stack.dtype.itemsize
                         + b_stack.size * 4 + B * h_pad * 4)

    out_padded = pl.pallas_call(
        kernel,
        out_shape=jax.ShapeDtypeStruct((B, h_pad), jnp.float32),
        grid=grid,
        in_specs=in_specs,
        out_specs=out_spec,
        compiler_params=pltpu.CompilerParams(
            dimension_semantics=("parallel",),
            vmem_limit_bytes=vmem_limit_bytes,
        ),
        cost_estimate=pl.CostEstimate(
            flops=flops, transcendentals=0, bytes_accessed=bytes_accessed),
    )(x2d, pw1, w_stack, b_stack)

    return out_padded[:, :out_dim]


def pfn_reference(x, params, input_size=4, matmul_dtype=jnp.float32):
    """Pure-JAX reference mirroring the PyTorch forward.

    matmul_dtype=bfloat16 reproduces the kernel precision (f32 first phi layer
    on the VPU, bf16 MXU inputs / f32 accumulation elsewhere); float32
    approximates the exact module math.
    """
    B, P, F = x.shape
    x = jnp.nan_to_num(x)

    def dense(a, w, b):
        return jnp.dot(a.astype(matmul_dtype), w.astype(matmul_dtype),
                       preferred_element_type=jnp.float32) + b

    # First phi layer exactly in f32 (the kernel computes it on the VPU).
    w1, b1 = params[0]
    h = jnp.maximum(jnp.sum(x[..., None] * w1, axis=-2) + b1, 0.0)   # [B,P,100]
    for i in (1, 2):
        w, b = params[i]
        h = jnp.maximum(dense(h, w, b), 0.0)
    w, b = params[3]
    z = dense(h, w, b)                                       # [B, P, L]
    pooled = jnp.mean(z, axis=1) * input_size                # AvgPool2d((P,1)) * input_size
    g = pooled
    for i in range(4, 8):
        w, b = params[i]
        g = jnp.maximum(dense(g, w, b), 0.0)
    w, b = params[8]
    return dense(g, w, b)                                    # [B, 1]


if __name__ == "__main__":
    latent_space_dim = 16
    input_size = 4
    total_features = 32
    n_particles = total_features // input_size               # 8

    params = make_params(latent_space_dim, jax.random.PRNGKey(42))
    key = jax.random.PRNGKey(0)

    # --- small batch (single grid step), exercises the nan_to_num path ---
    key, kx = jax.random.split(key)
    x = jax.random.normal(kx, (2, n_particles, input_size), jnp.float32)
    x = x.at[0, 1, :].set(jnp.nan)                           # masked / padded particle

    out = jax.block_until_ready(pfn_forward(x, params, input_size=input_size))
    assert out.shape == (2, 1), out.shape

    ref_match = pfn_reference(x, params, input_size=input_size,
                              matmul_dtype=jnp.bfloat16)
    ref_exact = pfn_reference(x, params, input_size=input_size,
                              matmul_dtype=jnp.float32)
    assert jnp.allclose(out, ref_match, atol=5e-3, rtol=5e-3), (out, ref_match)
    assert jnp.allclose(out, ref_exact, atol=1e-1, rtol=1e-1), (out, ref_exact)

    # --- multi-step grid with a ragged last tile (B % tile_b != 0) ---
    key, kx = jax.random.split(key)
    x2 = jax.random.normal(kx, (20, n_particles, input_size), jnp.float32)
    x2 = x2.at[3, 5, :].set(jnp.nan)

    out2 = jax.block_until_ready(pfn_forward(x2, params, input_size=input_size))
    assert out2.shape == (20, 1), out2.shape

    ref2 = pfn_reference(x2, params, input_size=input_size,
                         matmul_dtype=jnp.bfloat16)
    assert jnp.allclose(out2, ref2, atol=1e-2, rtol=1e-2), (out2, ref2)

    print("KERNEL_OK")
</pallas_src>

<mosaic_0001>
module attributes {stable_mosaic.version = 11 : i64} {
  func.func @kernel(%arg0: i32, %arg1: memref<16x4xf32, #tpu.memory_space<vmem>>, %arg2: memref<4x128xf32, #tpu.memory_space<vmem>>, %arg3: memref<8x128x128xbf16, #tpu.memory_space<vmem>>, %arg4: memref<9x128xf32, #tpu.memory_space<vmem>>, %arg5: memref<2x128xf32, #tpu.memory_space<vmem>>) attributes {dimension_semantics = [#tpu.dimension_semantics<parallel>], iteration_bounds = array<i64: 1>, scalar_prefetch = 0 : i64, scratch_operands = 0 : i64, tpu.core_type = #tpu.core_type<tc>, window_params = [{transform_indices = @transform_0, window_bounds = array<i64: 16, 4>}, {pipeline_mode = #tpu.pipeline_mode<synchronous>, transform_indices = @transform_1, window_bounds = array<i64: 4, 128>}, {pipeline_mode = #tpu.pipeline_mode<synchronous>, transform_indices = @transform_2, window_bounds = array<i64: 8, 128, 128>}, {pipeline_mode = #tpu.pipeline_mode<synchronous>, transform_indices = @transform_3, window_bounds = array<i64: 9, 128>}, {transform_indices = @transform_4, window_bounds = array<i64: 2, 128>}]} {
    %c0 = arith.constant 0 : index
    %c0_0 = arith.constant 0 : index
    %0 = vector.load %arg1[%c0, %c0_0] : memref<16x4xf32, #tpu.memory_space<vmem>>, vector<16x4xf32>
    %1 = arith.cmpf one, %0, %0 : vector<16x4xf32>
    %cst = arith.constant 0.000000e+00 : f32
    %2 = vector.broadcast %cst : f32 to vector<16x4xf32>
    %3 = arith.select %1, %2, %0 : vector<16x4xi1>, vector<16x4xf32>
    %cst_1 = arith.constant 0x7F800000 : f32
    %4 = vector.broadcast %cst_1 : f32 to vector<16x4xf32>
    %5 = arith.cmpf oeq, %3, %4 : vector<16x4xf32>
    %cst_2 = arith.constant 3.40282347E+38 : f32
    %6 = vector.broadcast %cst_2 : f32 to vector<16x4xf32>
    %7 = arith.select %5, %6, %3 : vector<16x4xi1>, vector<16x4xf32>
    %cst_3 = arith.constant 0xFF800000 : f32
    %8 = vector.broadcast %cst_3 : f32 to vector<16x4xf32>
    %9 = arith.cmpf oeq, %7, %8 : vector<16x4xf32>
    %cst_4 = arith.constant -3.40282347E+38 : f32
    %10 = vector.broadcast %cst_4 : f32 to vector<16x4xf32>
    %11 = arith.select %9, %10, %7 : vector<16x4xi1>, vector<16x4xf32>
    %c0_5 = arith.constant 0 : index
    %c0_6 = arith.constant 0 : index
    %12 = vector.load %arg4[%c0_5, %c0_6] : memref<9x128xf32, #tpu.memory_space<vmem>>, vector<1x128xf32>
    %13 = vector.extract_strided_slice %11 {offsets = [0, 0], sizes = [16, 1], strides = [1, 1]} : vector<16x4xf32> to vector<16x1xf32>
    %c0_7 = arith.constant 0 : index
    %c0_8 = arith.constant 0 : index
    %14 = vector.load %arg2[%c0_7, %c0_8] : memref<4x128xf32, #tpu.memory_space<vmem>>, vector<1x128xf32>
    %15 = vector.broadcast %13 : vector<16x1xf32> to vector<16x128xf32>
    %16 = vector.broadcast %14 : vector<1x128xf32> to vector<16x128xf32>
    %17 = arith.mulf %15, %16 : vector<16x128xf32>
    %18 = vector.broadcast %12 : vector<1x128xf32> to vector<16x128xf32>
    %19 = arith.addf %18, %17 : vector<16x128xf32>
    %20 = vector.extract_strided_slice %11 {offsets = [0, 1], sizes = [16, 1], strides = [1, 1]} : vector<16x4xf32> to vector<16x1xf32>
    %c1 = arith.constant 1 : index
    %c0_9 = arith.constant 0 : index
    %21 = vector.load %arg2[%c1, %c0_9] : memref<4x128xf32, #tpu.memory_space<vmem>>, vector<1x128xf32>
    %22 = vector.broadcast %20 : vector<16x1xf32> to vector<16x128xf32>
    %23 = vector.broadcast %21 : vector<1x128xf32> to vector<16x128xf32>
    %24 = arith.mulf %22, %23 : vector<16x128xf32>
    %25 = arith.addf %19, %24 : vector<16x128xf32>
    %26 = vector.extract_strided_slice %11 {offsets = [0, 2], sizes = [16, 1], strides = [1, 1]} : vector<16x4xf32> to vector<16x1xf32>
    %c2 = arith.constant 2 : index
    %c0_10 = arith.constant 0 : index
    %27 = vector.load %arg2[%c2, %c0_10] : memref<4x128xf32, #tpu.memory_space<vmem>>, vector<1x128xf32>
    %28 = vector.broadcast %26 : vector<16x1xf32> to vector<16x128xf32>
    %29 = vector.broadcast %27 : vector<1x128xf32> to vector<16x128xf32>
    %30 = arith.mulf %28, %29 : vector<16x128xf32>
    %31 = arith.addf %25, %30 : vector<16x128xf32>
    %32 = vector.extract_strided_slice %11 {offsets = [0, 3], sizes = [16, 1], strides = [1, 1]} : vector<16x4xf32> to vector<16x1xf32>
    %c3 = arith.constant 3 : index
    %c0_11 = arith.constant 0 : index
    %33 = vector.load %arg2[%c3, %c0_11] : memref<4x128xf32, #tpu.memory_space<vmem>>, vector<1x128xf32>
    %34 = vector.broadcast %32 : vector<16x1xf32> to vector<16x128xf32>
    %35 = vector.broadcast %33 : vector<1x128xf32> to vector<16x128xf32>
    %36 = arith.mulf %34, %35 : vector<16x128xf32>
    %37 = arith.addf %31, %36 : vector<16x128xf32>
    %cst_12 = arith.constant 0.000000e+00 : f32
    %38 = vector.broadcast %cst_12 : f32 to vector<16x128xf32>
    %39 = arith.maximumf %37, %38 : vector<16x128xf32>
    %40 = arith.truncf %39 : vector<16x128xf32> to vector<16x128xbf16>
    %c0_13 = arith.constant 0 : index
    %c0_14 = arith.constant 0 : index
    %c0_15 = arith.constant 0 : index
    %41 = vector.load %arg3[%c0_13, %c0_14, %c0_15] : memref<8x128x128xbf16, #tpu.memory_space<vmem>>, vector<1x128x128xbf16>
    %42 = vector.shape_cast %41 : vector<1x128x128xbf16> to vector<128x128xbf16>
    %cst_16 = arith.constant dense<0.000000e+00> : vector<16x128xf32>
    %43 = tpu.matmul %40, %42, %cst_16 {dimension_numbers = #tpu.dot_dimension_numbers<[1], [0], [0], [1], [0, 0, 1, 1], [], []>} : vector<16x128xbf16>, vector<128x128xbf16>, vector<16x128xf32> -> vector<16x128xf32>
    %c1_17 = arith.constant 1 : index
    %c0_18 = arith.constant 0 : index
    %44 = vector.load %arg4[%c1_17, %c0_18] : memref<9x128xf32, #tpu.memory_space<vmem>>, vector<1x128xf32>
    %45 = vector.broadcast %44 : vector<1x128xf32> to vector<16x128xf32>
    %46 = arith.addf %43, %45 : vector<16x128xf32>
    %cst_19 = arith.constant 0.000000e+00 : f32
    %47 = vector.broadcast %cst_19 : f32 to vector<16x128xf32>
    %48 = arith.maximumf %46, %47 : vector<16x128xf32>
    %49 = arith.truncf %48 : vector<16x128xf32> to vector<16x128xbf16>
    %c1_20 = arith.constant 1 : index
    %c0_21 = arith.constant 0 : index
    %c0_22 = arith.constant 0 : index
    %50 = vector.load %arg3[%c1_20, %c0_21, %c0_22] : memref<8x128x128xbf16, #tpu.memory_space<vmem>>, vector<1x128x128xbf16>
    %51 = vector.shape_cast %50 : vector<1x128x128xbf16> to vector<128x128xbf16>
    %cst_23 = arith.constant dense<0.000000e+00> : vector<16x128xf32>
    %52 = tpu.matmul %49, %51, %cst_23 {dimension_numbers = #tpu.dot_dimension_numbers<[1], [0], [0], [1], [0, 0, 1, 1], [], []>} : vector<16x128xbf16>, vector<128x128xbf16>, vector<16x128xf32> -> vector<16x128xf32>
    %c2_24 = arith.constant 2 : index
    %c0_25 = arith.constant 0 : index
    %53 = vector.load %arg4[%c2_24, %c0_25] : memref<9x128xf32, #tpu.memory_space<vmem>>, vector<1x128xf32>
    %54 = vector.broadcast %53 : vector<1x128xf32> to vector<16x128xf32>
    %55 = arith.addf %52, %54 : vector<16x128xf32>
    %cst_26 = arith.constant 0.000000e+00 : f32
    %56 = vector.broadcast %cst_26 : f32 to vector<16x128xf32>
    %57 = arith.maximumf %55, %56 : vector<16x128xf32>
    %58 = arith.truncf %57 : vector<16x128xf32> to vector<16x128xbf16>
    %c2_27 = arith.constant 2 : index
    %c0_28 = arith.constant 0 : index
    %c0_29 = arith.constant 0 : index
    %59 = vector.load %arg3[%c2_27, %c0_28, %c0_29] : memref<8x128x128xbf16, #tpu.memory_space<vmem>>, vector<1x128x128xbf16>
    %60 = vector.shape_cast %59 : vector<1x128x128xbf16> to vector<128x128xbf16>
    %cst_30 = arith.constant dense<0.000000e+00> : vector<16x128xf32>
    %61 = tpu.matmul %58, %60, %cst_30 {dimension_numbers = #tpu.dot_dimension_numbers<[1], [0], [0], [1], [0, 0, 1, 1], [], []>} : vector<16x128xbf16>, vector<128x128xbf16>, vector<16x128xf32> -> vector<16x128xf32>
    %c3_31 = arith.constant 3 : index
    %c0_32 = arith.constant 0 : index
    %62 = vector.load %arg4[%c3_31, %c0_32] : memref<9x128xf32, #tpu.memory_space<vmem>>, vector<1x128xf32>
    %63 = vector.broadcast %62 : vector<1x128xf32> to vector<16x128xf32>
    %64 = arith.addf %61, %63 : vector<16x128xf32>
    %65 = vector.shape_cast %64 : vector<16x128xf32> to vector<2x8x128xf32>
    %cst_33 = arith.constant dense<0.000000e+00> : vector<2x128xf32>
    %66 = vector.multi_reduction <add>, %65, %cst_33 [1] : vector<2x8x128xf32> to vector<2x128xf32>
    %cst_34 = arith.constant 5.000000e-01 : f32
    %67 = vector.broadcast %cst_34 : f32 to vector<2x128xf32>
    %68 = arith.mulf %66, %67 : vector<2x128xf32>
    %69 = arith.truncf %68 : vector<2x128xf32> to vector<2x128xbf16>
    %c3_35 = arith.constant 3 : index
    %c0_36 = arith.constant 0 : index
    %c0_37 = arith.constant 0 : index
    %70 = vector.load %arg3[%c3_35, %c0_36, %c0_37] : memref<8x128x128xbf16, #tpu.memory_space<vmem>>, vector<1x128x128xbf16>
    %71 = vector.shape_cast %70 : vector<1x128x128xbf16> to vector<128x128xbf16>
    %cst_38 = arith.constant dense<0.000000e+00> : vector<2x128xf32>
    %72 = tpu.matmul %69, %71, %cst_38 {dimension_numbers = #tpu.dot_dimension_numbers<[1], [0], [0], [1], [0, 0, 1, 1], [], []>} : vector<2x128xbf16>, vector<128x128xbf16>, vector<2x128xf32> -> vector<2x128xf32>
    %c4 = arith.constant 4 : index
    %c0_39 = arith.constant 0 : index
    %73 = vector.load %arg4[%c4, %c0_39] : memref<9x128xf32, #tpu.memory_space<vmem>>, vector<1x128xf32>
    %74 = vector.broadcast %73 : vector<1x128xf32> to vector<2x128xf32>
    %75 = arith.addf %72, %74 : vector<2x128xf32>
    %cst_40 = arith.constant 0.000000e+00 : f32
    %76 = vector.broadcast %cst_40 : f32 to vector<2x128xf32>
    %77 = arith.maximumf %75, %76 : vector<2x128xf32>
    %78 = arith.truncf %77 : vector<2x128xf32> to vector<2x128xbf16>
    %c4_41 = arith.constant 4 : index
    %c0_42 = arith.constant 0 : index
    %c0_43 = arith.constant 0 : index
    %79 = vector.load %arg3[%c4_41, %c0_42, %c0_43] : memref<8x128x128xbf16, #tpu.memory_space<vmem>>, vector<1x128x128xbf16>
    %80 = vector.shape_cast %79 : vector<1x128x128xbf16> to vector<128x128xbf16>
    %cst_44 = arith.constant dense<0.000000e+00> : vector<2x128xf32>
    %81 = tpu.matmul %78, %80, %cst_44 {dimension_numbers = #tpu.dot_dimension_numbers<[1], [0], [0], [1], [0, 0, 1, 1], [], []>} : vector<2x128xbf16>, vector<128x128xbf16>, vector<2x128xf32> -> vector<2x128xf32>
    %c5 = arith.constant 5 : index
    %c0_45 = arith.constant 0 : index
    %82 = vector.load %arg4[%c5, %c0_45] : memref<9x128xf32, #tpu.memory_space<vmem>>, vector<1x128xf32>
    %83 = vector.broadcast %82 : vector<1x128xf32> to vector<2x128xf32>
    %84 = arith.addf %81, %83 : vector<2x128xf32>
    %cst_46 = arith.constant 0.000000e+00 : f32
    %85 = vector.broadcast %cst_46 : f32 to vector<2x128xf32>
    %86 = arith.maximumf %84, %85 : vector<2x128xf32>
    %87 = arith.truncf %86 : vector<2x128xf32> to vector<2x128xbf16>
    %c5_47 = arith.constant 5 : index
    %c0_48 = arith.constant 0 : index
    %c0_49 = arith.constant 0 : index
    %88 = vector.load %arg3[%c5_47, %c0_48, %c0_49] : memref<8x128x128xbf16, #tpu.memory_space<vmem>>, vector<1x128x128xbf16>
    %89 = vector.shape_cast %88 : vector<1x128x128xbf16> to vector<128x128xbf16>
    %cst_50 = arith.constant dense<0.000000e+00> : vector<2x128xf32>
    %90 = tpu.matmul %87, %89, %cst_50 {dimension_numbers = #tpu.dot_dimension_numbers<[1], [0], [0], [1], [0, 0, 1, 1], [], []>} : vector<2x128xbf16>, vector<128x128xbf16>, vector<2x128xf32> -> vector<2x128xf32>
    %c6 = arith.constant 6 : index
    %c0_51 = arith.constant 0 : index
    %91 = vector.load %arg4[%c6, %c0_51] : memref<9x128xf32, #tpu.memory_space<vmem>>, vector<1x128xf32>
    %92 = vector.broadcast %91 : vector<1x128xf32> to vector<2x128xf32>
    %93 = arith.addf %90, %92 : vector<2x128xf32>
    %cst_52 = arith.constant 0.000000e+00 : f32
    %94 = vector.broadcast %cst_52 : f32 to vector<2x128xf32>
    %95 = arith.maximumf %93, %94 : vector<2x128xf32>
    %96 = arith.truncf %95 : vector<2x128xf32> to vector<2x128xbf16>
    %c6_53 = arith.constant 6 : index
    %c0_54 = arith.constant 0 : index
    %c0_55 = arith.constant 0 : index
    %97 = vector.load %arg3[%c6_53, %c0_54, %c0_55] : memref<8x128x128xbf16, #tpu.memory_space<vmem>>, vector<1x128x128xbf16>
    %98 = vector.shape_cast %97 : vector<1x128x128xbf16> to vector<128x128xbf16>
    %cst_56 = arith.constant dense<0.000000e+00> : vector<2x128xf32>
    %99 = tpu.matmul %96, %98, %cst_56 {dimension_numbers = #tpu.dot_dimension_numbers<[1], [0], [0], [1], [0, 0, 1, 1], [], []>} : vector<2x128xbf16>, vector<128x128xbf16>, vector<2x128xf32> -> vector<2x128xf32>
    %c7 = arith.constant 7 : index
    %c0_57 = arith.constant 0 : index
    %100 = vector.load %arg4[%c7, %c0_57] : memref<9x128xf32, #tpu.memory_space<vmem>>, vector<1x128xf32>
    %101 = vector.broadcast %100 : vector<1x128xf32> to vector<2x128xf32>
    %102 = arith.addf %99, %101 : vector<2x128xf32>
    %cst_58 = arith.constant 0.000000e+00 : f32
    %103 = vector.broadcast %cst_58 : f32 to vector<2x128xf32>
    %104 = arith.maximumf %102, %103 : vector<2x128xf32>
    %105 = arith.truncf %104 : vector<2x128xf32> to vector<2x128xbf16>
    %c7_59 = arith.constant 7 : index
    %c0_60 = arith.constant 0 : index
    %c0_61 = arith.constant 0 : index
    %106 = vector.load %arg3[%c7_59, %c0_60, %c0_61] : memref<8x128x128xbf16, #tpu.memory_space<vmem>>, vector<1x128x128xbf16>
    %107 = vector.shape_cast %106 : vector<1x128x128xbf16> to vector<128x128xbf16>
    %cst_62 = arith.constant dense<0.000000e+00> : vector<2x128xf32>
    %108 = tpu.matmul %105, %107, %cst_62 {dimension_numbers = #tpu.dot_dimension_numbers<[1], [0], [0], [1], [0, 0, 1, 1], [], []>} : vector<2x128xbf16>, vector<128x128xbf16>, vector<2x128xf32> -> vector<2x128xf32>
    %c8 = arith.constant 8 : index
    %c0_63 = arith.constant 0 : index
    %109 = vector.load %arg4[%c8, %c0_63] : memref<9x128xf32, #tpu.memory_space<vmem>>, vector<1x128xf32>
    %110 = vector.broadcast %109 : vector<1x128xf32> to vector<2x128xf32>
    %111 = arith.addf %108, %110 : vector<2x128xf32>
    %c0_64 = arith.constant 0 : index
    %c0_65 = arith.constant 0 : index
    %112 = vector.load %arg5[%c0_64, %c0_65] : memref<2x128xf32, #tpu.memory_space<vmem>>, vector<2x128xf32>
    tpu.vector_store %arg5[%c0_64, %c0_65], %111 {strides = array<i32>} : memref<2x128xf32, #tpu.memory_space<vmem>>, vector<2x128xf32>,
    return
  }
  func.func @transform_0(%arg0: i32) -> (i32, i32) {
    %c0_i32 = arith.constant 0 : i32
    %c0_i32_0 = arith.constant 0 : i32
    return %arg0, %c0_i32 : i32, i32
  }
  func.func @transform_1(%arg0: i32) -> (i32, i32) {
    %c0_i32 = arith.constant 0 : i32
    %c0_i32_0 = arith.constant 0 : i32
    %c0_i32_1 = arith.constant 0 : i32
    return %c0_i32, %c0_i32_0 : i32, i32
  }
  func.func @transform_2(%arg0: i32) -> (i32, i32, i32) {
    %c0_i32 = arith.constant 0 : i32
    %c0_i32_0 = arith.constant 0 : i32
    %c0_i32_1 = arith.constant 0 : i32
    %c0_i32_2 = arith.constant 0 : i32
    return %c0_i32, %c0_i32_0, %c0_i32_1 : i32, i32, i32
  }
  func.func @transform_3(%arg0: i32) -> (i32, i32) {
    %c0_i32 = arith.constant 0 : i32
    %c0_i32_0 = arith.constant 0 : i32
    %c0_i32_1 = arith.constant 0 : i32
    return %c0_i32, %c0_i32_0 : i32, i32
  }
  func.func @transform_4(%arg0: i32) -> (i32, i32) {
    %c0_i32 = arith.constant 0 : i32
    %c0_i32_0 = arith.constant 0 : i32
    return %arg0, %c0_i32 : i32, i32
  }
}

</mosaic_0001>

<bundles_post_ra>
// kernel: tpu_custom_call.1
= control target key start
LH: loop header
LB: loop body
LE: loop exit
PB: predicated region body
PF: predicated region fallthrough
CT: control target
= control target key end

     0   :  { %9 = vsyncpa [#allocation3], 0  ;;  %s1682_s0 = inlined_call_operand.vmem [shape: f32[16,4], index: 0, kind: input, shape index: {}]   ;;  %s1683_s1 = inlined_call_operand.vmem [shape: f32[4,128], index: 1, kind: input, shape index: {}]   ;;  %s1684_s2 = inlined_call_operand.hbm [shape: bf16[8,128,128], index: 2, kind: input, shape index: {}]   ;;  %s1685_s3 = inlined_call_operand.vmem [shape: f32[9,128], index: 3, kind: input, shape index: {}]   ;;  %s1686_s4 = inlined_call_operand.hbm [shape: f32[2,128], index: 4, kind: output, shape index: {}]  }
   0x1   :  { %10 = vsyncpa [#allocation4], 0  ;;  %s1498_s15 = smov [#allocation2]   ;;  %s1450_s19 = scalar_lea.hbm %s1684_s2, 8192 }
   0x2   :  { %s20_s16 = sshll.u32 %s1498_s15, 4  ;;  %p1451_p0 = scmp.ne.s32.totalorder %s1684_s2, %s1450_s19  ;;  %s21_s16 = int_to_ptr.vmem [resolvable:$true] %s20_s16 }
   0x3   :  { %p1454_p1 = scmp.lt.u32.totalorder %s1450_s19, %s1684_s2 }
   0x5   :  { %p1456_p2 = pnand %p1454_p1, %p1451_p0 }
   0x7   :  { %1459 = shalt.err (!%p1456_p2)
}
   0x8   :  { %s1460_s24 = scalar_lea.vmem %s21_s16, 8192  ;;  %p1465_p4 = scmp.lt.s32.totalorder %s21_s16, %s21_s16 }
   0x9   :  { %p1461_p3 = scmp.ne.s32.totalorder %s21_s16, %s1460_s24  ;;  %p1466_p5 = scmp.lt.s32.totalorder %s1460_s24, %s1460_s24 }
   0xb   :  { %p1467_p6 = por %p1466_p5, %p1465_p4 }
   0xd   :  { %p1468_p7 = pnand %p1467_p6, %p1461_p3 }
   0xf   :  { %1471 = shalt.err (!%p1468_p7)
}
  0x10   :  { %s1499_s25 = smov 64   ;;  %s1500_s26 = smov 4  }
  0x11   :  { %26 = dma.hbm_to_vmem [thread:$0]  %s1684_s2, 8192, %s21_s16, [#allocation3], %s1499_s25, %s1499_s25, %s1500_s26  }
  0x12   :  { %1494 = dma.done.wait [#allocation3], 8192  }
  0x13   :  { %1495 = vsyncadd [#allocation3], 4294959104  ;;  %v1501_v0 = vmov 1   ;;  %v1502_v1 = vmov 0   ;;  %v1503_v2 = vmov 0.0   ;;  %v33_v3 = vld [vmem:[%s1682_s0] sm:$0xff] }
  0x14   :  { %1381 = vset.pattern.permute.xlu1 %v1501_v0  ;;  %1380 = vset.pattern.permute.xlu0 %v1502_v1  ;;  %v34_v4 = vld [vmem:[%s1682_s0 + $0x8] sm:$0xff]  ;;  %vm35_vm0 = vcmp.ne.f32.partialorder %v33_v3, %v33_v3  ;;  %v1387_v10 = vld [vmem:[#allocation2 + $0x8] sm:$0xff]   ;;  %v1388_v12 = vld [vmem:[#allocation2 + $0x10] sm:$0xff]   ;;  %v1504_v15 = vmov 2   ;;  %v1505_v17 = vmov 3   ;;  %vm1506_vm6 = vmmov 0  }
  0x15   :  { %1210 = vmatprep.subr.bf16.mxu0 %v1503_v2  ;;  %1230 = vmatprep.subr.bf16.mxu1 %v1503_v2  ;;  %vm36_vm1 = vcmp.ne.f32.partialorder %v34_v4, %v34_v4  ;;  %v1386_v5 = vld [vmem:[#allocation2] sm:$0xff]   ;;  %v37_v6 = vsel %vm35_vm0, 0.0, %v33_v3  ;;  %v1389_v14 = vld [vmem:[#allocation2 + $0x18] sm:$0xff]   ;;  %v1391_v18 = vld [vmem:[#allocation2 + $0x28] sm:$0xff]   ;;  %vm505_vm7 = vcmask 1041409   ;;  %s1507_s30 = smov [#allocation5]  }
  0x16   :  { %v38_v7 = vsel %vm36_vm1, 0.0, %v34_v4  ;;  %vm39_vm2 = vcmp.eq.f32.partialorder %v37_v6, inf  ;;  %1211 = vmatpush3.bf16.msra.mxu0 %v1386_v5  ;;  %v1390_v16 = vld [vmem:[#allocation2 + $0x20] sm:$0xff]   ;;  %v1392_v19 = vld [vmem:[#allocation2 + $0x30] sm:$0xff]   ;;  %1226 = vmatprep.mubr.msk.bf16.mxu0 %vm1506_vm6, %v1503_v2  ;;  %v1393_v21 = vld [vmem:[#allocation2 + $0x38] sm:$0xff]   ;;  %s1052_s5 = sshll.u32 %s1507_s30, 4  ;;  %s1053_s5 = int_to_ptr.vmem [resolvable:$true] %s1052_s5 }
  0x17   :  { %vm40_vm3 = vcmp.eq.f32.partialorder %v38_v7, inf  ;;  %v41_v8 = vsel %vm39_vm2, 3.4028235e+38, %v37_v6  ;;  %1212 = vmatprep.subr.bf16.mxu0 %v1503_v2  ;;  %1246 = vmatprep.mubr.msk.bf16.mxu1 %vm1506_vm6, %v1503_v2  ;;  %v1394_v20 = vld [vmem:[#allocation2 + $0x40] sm:$0xff]   ;;  %v1395_v22 = vld [vmem:[#allocation2 + $0x48] sm:$0xff]   ;;  %v1396_v23 = vld [vmem:[#allocation2 + $0x50] sm:$0xff]   ;;  %p1477_p9 = scmp.lt.s32.totalorder %s1053_s5, %s1053_s5 }
  0x18   :  { %v42_v9 = vsel %vm40_vm3, 3.4028235e+38, %v38_v7  ;;  %vm43_vm4 = vcmp.eq.f32.partialorder %v41_v8, -inf  ;;  %1231 = vmatpush3.bf16.msra.mxu1 %v1394_v20  ;;  %v1397_v24 = vld [vmem:[#allocation2 + $0x58] sm:$0xff]   ;;  %v1398_v25 = vld [vmem:[#allocation2 + $0x60] sm:$0xff]   ;;  %v1399_v26 = vld [vmem:[#allocation2 + $0x68] sm:$0xff]  }
  0x19   :  { %vm44_vm5 = vcmp.eq.f32.partialorder %v42_v9, -inf  ;;  %v45_v11 = vsel %vm43_vm4, -3.4028235e+38, %v41_v8  ;;  %1232 = vmatprep.subr.bf16.mxu1 %v1503_v2  ;;  %v1061_v29 = vld [vmem:[%s1683_s1] ss:$0 sm:$0xff]  ;;  %v1400_v59 = vld [vmem:[#allocation2 + $0x70] sm:$0xff]  }
  0x1a   :  { %73 = vperm.xlu1 %1381, %v45_v11   ;;  %51 = vperm.xlu0 %1380, %v45_v11   ;;  %v46_v13 = vsel %vm44_vm5, -3.4028235e+38, %v42_v9  ;;  %v1062_v34 = vld [vmem:[%s1685_s3] ss:$0 sm:$0xff]  ;;  %v1063_v36 = vld [vmem:[%s1683_s1 + $0x1] ss:$0 sm:$0xff] }
  0x1b   :  { %1213 = vmatpush3.bf16.msra.mxu0 %v1387_v10  ;;  %v1064_v37 = vld [vmem:[%s1683_s1 + $0x2] ss:$0 sm:$0xff]  ;;  %v1065_v46 = vld [vmem:[%s1683_s1 + $0x3] ss:$0 sm:$0xff]  ;;  %v1402_v61 = vld [vmem:[#allocation2 + $0x80] sm:$0xff]   ;;  %s1472_s6 = scalar_lea.vmem %s1053_s5, 32 }
  0x1c   :  { %1214 = vmatprep.subr.bf16.mxu0 %v1503_v2  ;;  %1233 = vmatpush3.bf16.msra.mxu1 %v1395_v22  ;;  %v1401_v60 = vld [vmem:[#allocation2 + $0x78] sm:$0xff]   ;;  %v1403_v62 = vld [vmem:[#allocation2 + $0x88] sm:$0xff]   ;;  %v1404_v63 = vld [vmem:[#allocation2 + $0x90] sm:$0xff]   ;;  %p1473_p8 = scmp.ne.s32.totalorder %s1053_s5, %s1472_s6  ;;  %p1478_p10 = scmp.lt.s32.totalorder %s1472_s6, %s1472_s6 }
  0x1d   :  { %1234 = vmatprep.subr.bf16.mxu1 %v1503_v2  ;;  %v1405_v0 = vld [vmem:[#allocation2 + $0x98] sm:$0xff]   ;;  %v1406_v1 = vld [vmem:[#allocation2 + $0xa0] sm:$0xff]   ;;  %v1407_v3 = vld [vmem:[#allocation2 + $0xa8] sm:$0xff]  }
  0x1e   :  { %77 = vperm.xlu1 %1381, %v46_v13   ;;  %56 = vperm.xlu0 %1380, %v46_v13   ;;  %v1066_v4 = vld [vmem:[%s1685_s3 + $0x1] ss:$0 sm:$0xff]  ;;  %p1479_p11 = por %p1478_p10, %p1477_p9 }
  0x1f   :  { %1215 = vmatpush3.bf16.msra.mxu0 %v1388_v12 }
  0x20   :  { %1216 = vmatprep.subr.bf16.mxu0 %v1503_v2  ;;  %1235 = vmatpush3.bf16.msra.mxu1 %v1396_v23  ;;  %p1480_p12 = pnand %p1479_p11, %p1473_p8 }
  0x21   :  { %1236 = vmatprep.subr.bf16.mxu1 %v1503_v2 }
  0x22   :  { %1383 = vset.pattern.permute.xlu1 %v1504_v15  ;;  %1382 = vset.pattern.permute.xlu0 %v1504_v15  ;;  %v1409_v15 = vld [vmem:[#allocation2 + $0xb8] sm:$0xff]  }
  0x23   :  { %94 = vperm.xlu1 %1383, %v46_v13   ;;  %90 = vperm.xlu0 %1382, %v45_v11  }
  0x24   :  { %1217 = vmatpush3.bf16.msra.mxu0 %v1389_v14  ;;  %1237 = vmatpush3.bf16.msra.mxu1 %v1397_v24  ;;  %v1408_v14 = vld [vmem:[#allocation2 + $0xb0] sm:$0xff]  }
  0x25   :  { %1218 = vmatprep.subr.bf16.mxu0 %v1503_v2  ;;  %1238 = vmatprep.subr.bf16.mxu1 %v1503_v2 }
  0x27   :  { %1384 = vset.pattern.permute.xlu1 %v1505_v17  ;;  %1385 = vset.pattern.permute.xlu0 %v1505_v17  ;;  %v1411_v17 = vld [vmem:[#allocation2 + $0xc8] sm:$0xff]  }
  0x28   :  { %107 = vperm.xlu1 %1384, %v45_v11   ;;  %111 = vperm.xlu0 %1385, %v46_v13  }
  0x29   :  { %1219 = vmatpush3.bf16.msra.mxu0 %v1390_v16  ;;  %1239 = vmatpush3.bf16.msra.mxu1 %v1398_v25  ;;  %v1410_v16 = vld [vmem:[#allocation2 + $0xc0] sm:$0xff]  }
  0x2a   :  { %1220 = vmatprep.subr.bf16.mxu0 %v1503_v2  ;;  %1240 = vmatprep.subr.bf16.mxu1 %v1503_v2 }
  0x2d   :  { %1221 = vmatpush3.bf16.msra.mxu0 %v1391_v18  ;;  %1241 = vmatpush3.bf16.msra.mxu1 %v1399_v26  ;;  %v1075_v18 = vld [vmem:[%s1685_s3 + $0x2] ss:$0 sm:$0xff] }
  0x2e   :  { %1222 = vmatprep.subr.bf16.mxu0 %v1503_v2  ;;  %1242 = vmatprep.subr.bf16.mxu1 %v1503_v2 }
  0x31   :  { %1223 = vmatpush3.bf16.msra.mxu0 %v1392_v19  ;;  %1243 = vmatpush3.bf16.msra.mxu1 %v1400_v59 }
  0x32   :  { %1224 = vmatprep.subr.bf16.mxu0 %v1503_v2  ;;  %1244 = vmatprep.subr.bf16.mxu1 %v1503_v2 }
  0x35   :  { %1225 = vmatpush3.bf16.msra.mxu0 %v1393_v21  ;;  %1245 = vmatpush3.bf16.msra.mxu1 %v1401_v60 }
  0x36   :  { %1250 = vmatprep.subr.bf16.mxu0 %v1503_v2  ;;  %1270 = vmatprep.subr.bf16.mxu1 %v1503_v2 }
  0x99   :  { %v74_v27 = vpop.permute.xlu1 %73  ;;  %v52_v28 = vpop.permute.xlu0 %51 }
  0x9a   :  { %v63_v32 = vmul.f32 %v1061_v29, %v52_v28  ;;  %v84_v42 = vmul.f32 %v1063_v36, %v74_v27  ;;  %v1412_v28 = vld [vmem:[#allocation2 + $0xd0] sm:$0xff]  }
  0x9c   :  { %v69_v38 = vadd.f32 %v1062_v34, %v63_v32  ;;  %v1416_v32 = vld [vmem:[#allocation2 + $0xf0] sm:$0xff]  }
  0x9d   :  { %v78_v30 = vpop.permute.xlu1 %77  ;;  %v57_v31 = vpop.permute.xlu0 %56 }
  0x9e   :  { %v64_v33 = vmul.f32 %v1061_v29, %v57_v31  ;;  %v85_v39 = vmul.f32 %v1063_v36, %v78_v30  ;;  %v86_v47 = vadd.f32 %v84_v42, %v69_v38  ;;  %v1413_v29 = vld [vmem:[#allocation2 + $0xd8] sm:$0xff]   ;;  %v1414_v30 = vld [vmem:[#allocation2 + $0xe0] sm:$0xff]   ;;  %v1415_v31 = vld [vmem:[#allocation2 + $0xe8] sm:$0xff]  }
  0x9f   :  { %v1420_v36 = vld [vmem:[#allocation2 + $0x110] sm:$0xff]   ;;  %v1422_v38 = vld [vmem:[#allocation2 + $0x120] sm:$0xff]  }
  0xa0   :  { %v70_v35 = vadd.f32 %v1062_v34, %v64_v33  ;;  %v1417_v33 = vld [vmem:[#allocation2 + $0xf8] sm:$0xff]   ;;  %v1418_v34 = vld [vmem:[#allocation2 + $0x100] sm:$0xff]  }
  0xa2   :  { %v95_v40 = vpop.permute.xlu1 %94  ;;  %v91_v41 = vpop.permute.xlu0 %90  ;;  %v87_v43 = vadd.f32 %v85_v39, %v70_v35  ;;  %v1419_v35 = vld [vmem:[#allocation2 + $0x108] sm:$0xff]  }
  0xa3   :  { %v102_v44 = vmul.f32 %v1064_v37, %v95_v40  ;;  %v101_v45 = vmul.f32 %v1064_v37, %v91_v41  ;;  %v1421_v37 = vld [vmem:[#allocation2 + $0x118] sm:$0xff]   ;;  %v1423_v39 = vld [vmem:[#allocation2 + $0x128] sm:$0xff]  }
  0xa4   :  { %v1084_v40 = vld [vmem:[%s1685_s3 + $0x3] ss:$0 sm:$0xff] }
  0xa5   :  { %v104_v50 = vadd.f32 %v102_v44, %v87_v43  ;;  %v103_v51 = vadd.f32 %v101_v45, %v86_v47 }
  0xa7   :  { %v108_v48 = vpop.permute.xlu1 %107  ;;  %v112_v49 = vpop.permute.xlu0 %111 }
  0xa8   :  { %v118_v52 = vmul.f32 %v1065_v46, %v108_v48  ;;  %v119_v53 = vmul.f32 %v1065_v46, %v112_v49 }
  0xaa   :  { %v120_v54 = vadd.f32 %v118_v52, %v103_v51  ;;  %v121_v55 = vadd.f32 %v119_v53, %v104_v50 }
  0xac   :  { %v122_v56 = vmax.f32 %v120_v54, 0.0  ;;  %v123_v57 = vmax.f32 %v121_v55, 0.0 }
  0xae   :  { %v124_v58 = vpack.c.bf16 %v123_v57, %v122_v56 }
  0xb0   :  { %1227 = vmatmul.mubr.bf16.vlgmr.msra.gmra.mrb[0].mxu0 %v124_v58 }
  0xb1   :  { %1266 = vmatprep.mubr.msk.bf16.mxu0 %vm1506_vm6, %v1503_v2  ;;  %1251 = vmatpush3.bf16.msra.mxu0 %v1402_v61 }
  0xb2   :  { %1252 = vmatprep.subr.bf16.mxu0 %v1503_v2 }
  0xb5   :  { %1253 = vmatpush3.bf16.msra.mxu0 %v1403_v62 }
  0xb6   :  { %1254 = vmatprep.subr.bf16.mxu0 %v1503_v2 }
  0xb9   :  { %1255 = vmatpush3.bf16.msra.mxu0 %v1404_v63 }
  0xba   :  { %1256 = vmatprep.subr.bf16.mxu0 %v1503_v2 }
  0xbd   :  { %1257 = vmatpush3.bf16.msra.mxu0 %v1405_v0 }
  0xbe   :  { %1258 = vmatprep.subr.bf16.mxu0 %v1503_v2 }
  0xc1   :  { %1259 = vmatpush3.bf16.msra.mxu0 %v1406_v1 }
  0xc2   :  { %1260 = vmatprep.subr.bf16.mxu0 %v1503_v2 }
  0xc5   :  { %1261 = vmatpush3.bf16.msra.mxu0 %v1407_v3 }
  0xc6   :  { %1262 = vmatprep.subr.bf16.mxu0 %v1503_v2 }
  0xc9   :  { %1263 = vmatpush3.bf16.msra.mxu0 %v1408_v14 }
  0xca   :  { %1264 = vmatprep.subr.bf16.mxu0 %v1503_v2 }
  0xcd   :  { %1265 = vmatpush3.bf16.msra.mxu0 %v1409_v15 }
  0xce   :  { %1290 = vmatprep.subr.bf16.mxu0 %v1503_v2 }
 0x183   :  { %v228_v5 = vpop.f32.mrb[0].mxu0 }
 0x184   :  { %v229_v6 = vadd.f32 %v1066_v4, %v228_v5  ;;  %v1228_v7 = vpop.f32.mrb[1].mxu0  ;;  %v1425_v5 = vld [vmem:[#allocation2 + $0x138] sm:$0xff]  }
 0x185   :  { %v231_v8 = vpop.f32.mrb[2].mxu0  ;;  %v1427_v7 = vld [vmem:[#allocation2 + $0x148] sm:$0xff]  }
 0x186   :  { %v232_v9 = vadd.f32 %v1066_v4, %v231_v8  ;;  %v1229_v10 = vpop.f32.mrb[3].mxu0  ;;  %v235_v11 = vmax.f32 %v229_v6, 0.0  ;;  %v1424_v4 = vld [vmem:[#allocation2 + $0x130] sm:$0xff]   ;;  %v1426_v6 = vld [vmem:[#allocation2 + $0x140] sm:$0xff]  }
 0x187   :  { %v1428_v8 = vld [vmem:[#allocation2 + $0x150] sm:$0xff]   ;;  %v1430_v10 = vld [vmem:[#allocation2 + $0x160] sm:$0xff]  }
 0x188   :  { %v236_v12 = vmax.f32 %v232_v9, 0.0  ;;  %v1429_v9 = vld [vmem:[#allocation2 + $0x158] sm:$0xff]  }
 0x18a   :  { %v237_v13 = vpack.c.bf16 %v236_v12, %v235_v11  ;;  %v1431_v11 = vld [vmem:[#allocation2 + $0x168] sm:$0xff]   ;;  %v1093_v12 = vld [vmem:[%s1685_s3 + $0x4] ss:$0 sm:$0xff] }
 0x18c   :  { %1247 = vmatmul.mubr.bf16.vlgmr.msra.gmra.mrb[0].mxu1 %v237_v13 }
 0x18d   :  { %1286 = vmatprep.mubr.msk.bf16.mxu1 %vm1506_vm6, %v1503_v2  ;;  %1271 = vmatpush3.bf16.msra.mxu1 %v1410_v16 }
 0x18e   :  { %1272 = vmatprep.subr.bf16.mxu1 %v1503_v2 }
 0x191   :  { %1273 = vmatpush3.bf16.msra.mxu1 %v1411_v17 }
 0x192   :  { %1274 = vmatprep.subr.bf16.mxu1 %v1503_v2 }
 0x195   :  { %1275 = vmatpush3.bf16.msra.mxu1 %v1412_v28  ;;  %v1102_v28 = vld [vmem:[%s1685_s3 + $0x5] ss:$0 sm:$0xff] }
 0x196   :  { %1276 = vmatprep.subr.bf16.mxu1 %v1503_v2 }
 0x199   :  { %1277 = vmatpush3.bf16.msra.mxu1 %v1413_v29 }
 0x19a   :  { %1278 = vmatprep.subr.bf16.mxu1 %v1503_v2 }
 0x19d   :  { %1279 = vmatpush3.bf16.msra.mxu1 %v1414_v30 }
 0x19e   :  { %1280 = vmatprep.subr.bf16.mxu1 %v1503_v2 }
 0x1a1   :  { %1281 = vmatpush3.bf16.msra.mxu1 %v1415_v31 }
 0x1a2   :  { %1282 = vmatprep.subr.bf16.mxu1 %v1503_v2 }
 0x1a5   :  { %1283 = vmatpush3.bf16.msra.mxu1 %v1416_v32 }
 0x1a6   :  { %1284 = vmatprep.subr.bf16.mxu1 %v1503_v2 }
 0x1a9   :  { %1285 = vmatpush3.bf16.msra.mxu1 %v1417_v33 }
 0x1aa   :  { %1310 = vmatprep.subr.bf16.mxu1 %v1503_v2 }
 0x25f   :  { %v342_v19 = vpop.f32.mrb[0].mxu1 }
 0x260   :  { %v343_v20 = vadd.f32 %v1075_v18, %v342_v19  ;;  %v1248_v21 = vpop.f32.mrb[1].mxu1 }
 0x261   :  { %v345_v22 = vpop.f32.mrb[2].mxu1  ;;  %v1433_v21 = vld [vmem:[#allocation2 + $0x178] sm:$0xff]  }
 0x262   :  { %v346_v23 = vadd.f32 %v1075_v18, %v345_v22  ;;  %v1249_v24 = vpop.f32.mrb[3].mxu1  ;;  %v349_v25 = vmax.f32 %v343_v20, 0.0  ;;  %v1432_v20 = vld [vmem:[#allocation2 + $0x170] sm:$0xff]   ;;  %v1434_v22 = vld [vmem:[#allocation2 + $0x180] sm:$0xff]  }
 0x263   :  { %v1436_v24 = vld [vmem:[#allocation2 + $0x190] sm:$0xff]  }
 0x264   :  { %v350_v26 = vmax.f32 %v346_v23, 0.0  ;;  %v1435_v23 = vld [vmem:[#allocation2 + $0x188] sm:$0xff]  }
 0x266   :  { %v351_v27 = vpack.c.bf16 %v350_v26, %v349_v25  ;;  %v1437_v25 = vld [vmem:[#allocation2 + $0x198] sm:$0xff]   ;;  %v1438_v26 = vld [vmem:[#allocation2 + $0x1a0] sm:$0xff]  }
 0x268   :  { %1267 = vmatmul.mubr.bf16.vlgmr.msra.gmra.mrb[4].mxu0 %v351_v27  ;;  %v1439_v27 = vld [vmem:[#allocation2 + $0x1a8] sm:$0xff]  }
 0x269   :  { %1306 = vmatprep.mubr.msk.bf16.mxu0 %vm1506_vm6, %v1503_v2  ;;  %1291 = vmatpush3.bf16.msra.mxu0 %v1418_v34 }
 0x26a   :  { %1292 = vmatprep.subr.bf16.mxu0 %v1503_v2 }
 0x26d   :  { %1293 = vmatpush3.bf16.msra.mxu0 %v1419_v35 }
 0x26e   :  { %1294 = vmatprep.subr.bf16.mxu0 %v1503_v2 }
 0x271   :  { %1295 = vmatpush3.bf16.msra.mxu0 %v1420_v36  ;;  %v1440_v36 = vld [vmem:[#allocation2 + $0x1b0] sm:$0xff]  }
 0x272   :  { %1296 = vmatprep.subr.bf16.mxu0 %v1503_v2 }
 0x275   :  { %1297 = vmatpush3.bf16.msra.mxu0 %v1421_v37  ;;  %v1441_v37 = vld [vmem:[#allocation2 + $0x1b8] sm:$0xff]  }
 0x276   :  { %1298 = vmatprep.subr.bf16.mxu0 %v1503_v2 }
 0x279   :  { %1299 = vmatpush3.bf16.msra.mxu0 %v1422_v38  ;;  %v1442_v38 = vld [vmem:[#allocation2 + $0x1c0] sm:$0xff]  }
 0x27a   :  { %1300 = vmatprep.subr.bf16.mxu0 %v1503_v2 }
 0x27d   :  { %1301 = vmatpush3.bf16.msra.mxu0 %v1423_v39  ;;  %v1443_v39 = vld [vmem:[#allocation2 + $0x1c8] sm:$0xff]  }
 0x27e   :  { %1302 = vmatprep.subr.bf16.mxu0 %v1503_v2 }
 0x281   :  { %1303 = vmatpush3.bf16.msra.mxu0 %v1424_v4 }
 0x282   :  { %1304 = vmatprep.subr.bf16.mxu0 %v1503_v2 }
 0x285   :  { %1305 = vmatpush3.bf16.msra.mxu0 %v1425_v5 }
 0x286   :  { %1330 = vmatprep.subr.bf16.mxu0 %v1503_v2 }
 0x33b   :  { %v456_v41 = vpop.f32.mrb[4].mxu0 }
 0x33c   :  { %v457_v42 = vadd.f32 %v1084_v40, %v456_v41  ;;  %v1268_v43 = vpop.f32.mrb[5].mxu0  ;;  %v1445_v41 = vld [vmem:[#allocation2 + $0x1d8] sm:$0xff]  }
 0x33d   :  { %v459_v44 = vpop.f32.mrb[6].mxu0  ;;  %v1447_v43 = vld [vmem:[#allocation2 + $0x1e8] sm:$0xff]  }
 0x33e   :  { %v463_v45 = vrot.slane %v457_v42, 4  ;;  %v460_v46 = vadd.f32 %v1084_v40, %v459_v44  ;;  %v1269_v47 = vpop.f32.mrb[7].mxu0  ;;  %v1444_v40 = vld [vmem:[#allocation2 + $0x1d0] sm:$0xff]   ;;  %v1111_v44 = vld [vmem:[%s1685_s3 + $0x6] ss:$0 sm:$0xff] }
 0x340   :  { %v464_v48 = vadd.f32 %v463_v45, %v457_v42  ;;  %v469_v49 = vrot.slane %v460_v46, 4  ;;  %v1446_v42 = vld [vmem:[#allocation2 + $0x1e0] sm:$0xff]  }
 0x342   :  { %v465_v50 = vrot.slane %v464_v48, 2  ;;  %v470_v51 = vadd.f32 %v469_v49, %v460_v46 }
 0x344   :  { %v466_v52 = vadd.f32 %v465_v50, %v464_v48  ;;  %v471_v53 = vrot.slane %v470_v51, 2 }
 0x346   :  { %v467_v54 = vrot.slane %v466_v52, 1  ;;  %v472_v55 = vadd.f32 %v471_v53, %v470_v51  ;;  %v1449_v53 = vld [vmem:[#allocation2 + $0x1f8] sm:$0xff]  }
 0x348   :  { %v468_v56 = vadd.f32 %v467_v54, %v466_v52  ;;  %v473_v57 = vrot.slane %v472_v55, 1  ;;  %v1448_v52 = vld [vmem:[#allocation2 + $0x1f0] sm:$0xff]   ;;  %v1120_v54 = vld [vmem:[%s1685_s3 + $0x7] ss:$0 sm:$0xff] }
 0x34a   :  { %v475_v58 = vmul.f32 0.5, %v468_v56  ;;  %v474_v59 = vadd.f32 %v473_v57, %v472_v55 }
 0x34c   :  { %v477_v60 = vpack.c.bf16 %v475_v58, %v475_v58  ;;  %v476_v61 = vmul.f32 0.5, %v474_v59 }
 0x34e   :  { %v478_v62 = vpack.c.bf16 %v476_v61, %v476_v61  ;;  %v503_v63 = vunpack.c.l.b16 %v477_v60 }
 0x350   :  { %v504_v0 = vunpack.c.l.b16 %v478_v62  ;;  %v1129_v62 = vld [vmem:[%s1685_s3 + $0x8] ss:$0 sm:$0xff] }
 0x352   :  { %v506_v1 = vsel %vm505_vm7, %v504_v0, %v503_v63 }
 0x353   :  { %v507_v3 = vpack.c.b16 %v506_v1, %v506_v1 }
 0x355   :  { %1287 = vmatmul.mubr.bf16.vlgmr.msra.gmra.mrb[4].mxu1 %v507_v3 }
 0x356   :  { %1326 = vmatprep.mubr.msk.bf16.mxu1 %vm1506_vm6, %v1503_v2  ;;  %1311 = vmatpush3.bf16.msra.mxu1 %v1426_v6 }
 0x357   :  { %1312 = vmatprep.subr.bf16.mxu1 %v1503_v2 }
 0x35a   :  { %1313 = vmatpush3.bf16.msra.mxu1 %v1427_v7 }
 0x35b   :  { %1314 = vmatprep.subr.bf16.mxu1 %v1503_v2 }
 0x35e   :  { %1315 = vmatpush3.bf16.msra.mxu1 %v1428_v8 }
 0x35f   :  { %1316 = vmatprep.subr.bf16.mxu1 %v1503_v2 }
 0x362   :  { %1317 = vmatpush3.bf16.msra.mxu1 %v1429_v9 }
 0x363   :  { %1318 = vmatprep.subr.bf16.mxu1 %v1503_v2 }
 0x366   :  { %1319 = vmatpush3.bf16.msra.mxu1 %v1430_v10 }
 0x367   :  { %1320 = vmatprep.subr.bf16.mxu1 %v1503_v2 }
 0x36a   :  { %1321 = vmatpush3.bf16.msra.mxu1 %v1431_v11 }
 0x36b   :  { %1322 = vmatprep.subr.bf16.mxu1 %v1503_v2 }
 0x36e   :  { %1323 = vmatpush3.bf16.msra.mxu1 %v1432_v20 }
 0x36f   :  { %1324 = vmatprep.subr.bf16.mxu1 %v1503_v2 }
 0x372   :  { %1325 = vmatpush3.bf16.msra.mxu1 %v1433_v21 }
 0x373   :  { %1350 = vmatprep.subr.bf16.mxu1 %v1503_v2 }
 0x428   :  { %v591_v13 = vpop.f32.mrb[4].mxu1 }
 0x429   :  { %v592_v14 = vadd.f32 %v1093_v12, %v591_v13  ;;  %v1288_v15 = vpop.f32.mrb[5].mxu1 }
 0x42a   :  { %v594_v16 = vpop.f32.mrb[6].mxu1 }
 0x42b   :  { %v597_v17 = vmax.f32 %v592_v14, 0.0  ;;  %v1289_v18 = vpop.f32.mrb[7].mxu1 }
 0x42d   :  { %v598_v19 = vpack.c.bf16 %v597_v17, %v597_v17 }
 0x42f   :  { %1307 = vmatmul.mubr.bf16.vlgmr.msra.gmra.mrb[8].mxu0 %v598_v19 }
 0x430   :  { %1346 = vmatprep.mubr.msk.bf16.mxu0 %vm1506_vm6, %v1503_v2  ;;  %1331 = vmatpush3.bf16.msra.mxu0 %v1434_v22 }
 0x431   :  { %1332 = vmatprep.subr.bf16.mxu0 %v1503_v2 }
 0x434   :  { %1333 = vmatpush3.bf16.msra.mxu0 %v1435_v23 }
 0x435   :  { %1334 = vmatprep.subr.bf16.mxu0 %v1503_v2 }
 0x438   :  { %1335 = vmatpush3.bf16.msra.mxu0 %v1436_v24 }
 0x439   :  { %1336 = vmatprep.subr.bf16.mxu0 %v1503_v2 }
 0x43c   :  { %1337 = vmatpush3.bf16.msra.mxu0 %v1437_v25 }
 0x43d   :  { %1338 = vmatprep.subr.bf16.mxu0 %v1503_v2 }
 0x440   :  { %1339 = vmatpush3.bf16.msra.mxu0 %v1438_v26 }
 0x441   :  { %1340 = vmatprep.subr.bf16.mxu0 %v1503_v2 }
 0x444   :  { %1341 = vmatpush3.bf16.msra.mxu0 %v1439_v27 }
 0x445   :  { %1342 = vmatprep.subr.bf16.mxu0 %v1503_v2 }
 0x448   :  { %1343 = vmatpush3.bf16.msra.mxu0 %v1440_v36 }
 0x449   :  { %1344 = vmatprep.subr.bf16.mxu0 %v1503_v2 }
 0x44c   :  { %1345 = vmatpush3.bf16.msra.mxu0 %v1441_v37 }
 0x502   :  { %v703_v29 = vpop.f32.mrb[8].mxu0 }
 0x503   :  { %v704_v30 = vadd.f32 %v1102_v28, %v703_v29  ;;  %v1308_v31 = vpop.f32.mrb[9].mxu0 }
 0x504   :  { %v706_v32 = vpop.f32.mrb[10].mxu0 }
 0x505   :  { %v709_v33 = vmax.f32 %v704_v30, 0.0  ;;  %v1309_v34 = vpop.f32.mrb[11].mxu0 }
 0x507   :  { %v710_v35 = vpack.c.bf16 %v709_v33, %v709_v33 }
 0x509   :  { %1327 = vmatmul.mubr.bf16.vlgmr.msra.gmra.mrb[8].mxu1 %v710_v35 }
 0x50a   :  { %1366 = vmatprep.mubr.msk.bf16.mxu1 %vm1506_vm6, %v1503_v2  ;;  %1351 = vmatpush3.bf16.msra.mxu1 %v1442_v38 }
 0x50b   :  { %1352 = vmatprep.subr.bf16.mxu1 %v1503_v2 }
 0x50e   :  { %1353 = vmatpush3.bf16.msra.mxu1 %v1443_v39 }
 0x50f   :  { %1354 = vmatprep.subr.bf16.mxu1 %v1503_v2 }
 0x512   :  { %1355 = vmatpush3.bf16.msra.mxu1 %v1444_v40 }
 0x513   :  { %1356 = vmatprep.subr.bf16.mxu1 %v1503_v2 }
 0x516   :  { %1357 = vmatpush3.bf16.msra.mxu1 %v1445_v41 }
 0x517   :  { %1358 = vmatprep.subr.bf16.mxu1 %v1503_v2 }
 0x51a   :  { %1359 = vmatpush3.bf16.msra.mxu1 %v1446_v42 }
 0x51b   :  { %1360 = vmatprep.subr.bf16.mxu1 %v1503_v2 }
 0x51e   :  { %1361 = vmatpush3.bf16.msra.mxu1 %v1447_v43 }
 0x51f   :  { %1362 = vmatprep.subr.bf16.mxu1 %v1503_v2 }
 0x522   :  { %1363 = vmatpush3.bf16.msra.mxu1 %v1448_v52 }
 0x523   :  { %1364 = vmatprep.subr.bf16.mxu1 %v1503_v2 }
 0x526   :  { %1365 = vmatpush3.bf16.msra.mxu1 %v1449_v53 }
 0x5dc   :  { %v815_v45 = vpop.f32.mrb[8].mxu1 }
 0x5dd   :  { %v816_v46 = vadd.f32 %v1111_v44, %v815_v45  ;;  %v1328_v47 = vpop.f32.mrb[9].mxu1 }
 0x5de   :  { %v818_v48 = vpop.f32.mrb[10].mxu1 }
 0x5df   :  { %v821_v49 = vmax.f32 %v816_v46, 0.0  ;;  %v1329_v50 = vpop.f32.mrb[11].mxu1 }
 0x5e1   :  { %v822_v51 = vpack.c.bf16 %v821_v49, %v821_v49 }
 0x5e3   :  { %1347 = vmatmul.mubr.bf16.vlgmr.msra.gmra.mrb[12].mxu0 %v822_v51 }
 0x6b6   :  { %v927_v55 = vpop.f32.mrb[12].mxu0 }
 0x6b7   :  { %v928_v56 = vadd.f32 %v1120_v54, %v927_v55  ;;  %v1348_v57 = vpop.f32.mrb[13].mxu0 }
 0x6b8   :  { %v930_v58 = vpop.f32.mrb[14].mxu0 }
 0x6b9   :  { %v933_v59 = vmax.f32 %v928_v56, 0.0  ;;  %v1349_v60 = vpop.f32.mrb[15].mxu0 }
 0x6bb   :  { %v934_v61 = vpack.c.bf16 %v933_v59, %v933_v59 }
 0x6bd   :  { %1367 = vmatmul.mubr.bf16.vlgmr.msra.gmra.mrb[12].mxu1 %v934_v61 }
 0x790   :  { %v1039_v2 = vpop.f32.mrb[12].mxu1 }
 0x791   :  { %v1040_v63 = vadd.f32 %v1129_v62, %v1039_v2  ;;  %v1368_v0 = vpop.f32.mrb[13].mxu1 }
 0x792   :  { %v1042_v1 = vpop.f32.mrb[14].mxu1 }
 0x793   :  { %1045 = vst [vmem:[#allocation5] sm:$0x3] %v1040_v63  ;;  %v1369_v3 = vpop.f32.mrb[15].mxu1 }
 0x794   :  { %1483 = shalt.err (!%p1480_p12)
}
 0x795   :  { %s1484_s3 = scalar_lea.hbm %s1686_s4, 32 }
 0x796   :  { %p1485_p13 = scmp.ne.s32.totalorder %s1686_s4, %s1484_s3  ;;  %p1488_p0 = scmp.lt.u32.totalorder %s1484_s3, %s1686_s4 }
 0x798   :  { %p1490_p1 = pnand %p1488_p0, %p1485_p13 }
 0x79a   :  { %1493 = shalt.err (!%p1490_p1)
}
 0x79b   :  { %1055 = dma.vmem_to_hbm [thread:$0]  %s1053_s5, 32, %s1686_s4, [#allocation4]  }
 0x79c   :  { %1496 = dma.done.wait [#allocation4], 32  }
 0x79d   :  { %1497 = vsyncadd [#allocation4], 4294967264 }
 0x79e   :  { %1059 = vsyncpa [#allocation3], 1 }
 0x79f   :  { %1060 = vsyncpa [#allocation4], 1 }

</bundles_post_ra>
